<compile_context>
chip_gen: v7x
topology: tpu7x:2x2x1
jax: 0.10.0
libtpu: 0.0.40
codegen_flags: <defaults>
</compile_context>

<pallas_src>
import jax
import jax.numpy as jnp
from jax.experimental import pallas as pl
from jax.experimental.pallas import tpu as pltpu


# ----------------------------------------------------------------------------
# helpers
# ----------------------------------------------------------------------------
def _round_up(x, m):
    return ((x + m - 1) // m) * m


def _pad_axis(x, target, axis):
    pad = target - x.shape[axis]
    if pad <= 0:
        return x
    widths = [(0, 0)] * x.ndim
    widths[axis] = (0, pad)
    return jnp.pad(x, widths)


# ----------------------------------------------------------------------------
# Pallas kernel: fused critic MLP + masked mean pooling (Bt batch rows / step)
# ----------------------------------------------------------------------------
def critic_kernel(x_ref, m_ref, w1_ref, b1_ref, w2_ref, b2_ref, out_ref):
    # layer 1 (per primitive): Linear -> ReLU.  bf16 operands, f32 accumulate,
    # elementwise math in f32 (no bf16 VPU path on v5e).
    h = jnp.dot(x_ref[...], w1_ref[...], preferred_element_type=jnp.float32)
    h = jnp.maximum(h + b1_ref[...], 0.0)                       # (Bt*P, Hp) f32

    # ModelCritic pooling folded through the (linear) second layer:
    #   sum_p(mask_p * (h_p @ W2 + b2)) / sum_p(mask_p) == (sum_p mask_p*h_p) @ W2 / den + b2
    # NOTE: only valid because the stand-in second layer is purely linear.
    bt, p, _ = m_ref.shape
    h3 = h.reshape(bt, p, h.shape[-1])                          # layout-preserving split (P==8)
    m = m_ref[...]                                              # (Bt, P, 1) f32
    pooled = jnp.sum(h3 * m, axis=1)                            # (Bt, Hp)  XLU sublane reduce
    den = jnp.sum(m, axis=1)                                    # (Bt, 1)

    num = jnp.dot(pooled, w2_ref[...], preferred_element_type=jnp.float32)  # (Bt, Cp)

    # EUP approx reciprocal + one Newton step (~f32 accuracy).  The clamp only affects
    # all-zero-mask rows (pure padding here), which become b2 instead of 0/0 NaN and
    # are sliced away by the wrapper.
    den = jnp.maximum(den, 1e-6)
    inv = pl.reciprocal(den, approx=True)
    inv = inv * (2.0 - den * inv)
    out_ref[...] = num * inv + b2_ref[...]


def prepare_critic_params(w1, b1, w2, b2):
    """Pad / cast the critic parameters once, outside the per-call path."""
    D, H = w1.shape
    C = w2.shape[1]
    Hp = _round_up(H, 128)
    Cp = _round_up(C, 128)            # lane-dense output slab
    f32 = jnp.float32
    return dict(
        w1=_pad_axis(w1.astype(jnp.bfloat16), Hp, 1),             # (D, Hp) bf16, true K=D
        b1=_pad_axis(b1.astype(f32), Hp, 1),                      # (1, Hp)  f32
        w2=_pad_axis(_pad_axis(w2.astype(f32), Hp, 0), Cp, 1),    # (Hp, Cp) f32 (tiny)
        b2=_pad_axis(b2.astype(f32), Cp, 1),                      # (1, Cp)  f32
        dims=(D, H, C),
    )


def critic_forward(obs, mask, params, *, batch_rows_per_step=None):
    B, P, D = obs.shape
    D_w, _H, C = params["dims"]
    assert D == D_w, "obs feature dim must match the critic input size"
    w1p, b1p, w2p, b2p = params["w1"], params["b1"], params["w2"], params["b2"]
    Hp = w1p.shape[1]
    Cp = w2p.shape[1]

    # Batch rows per grid step: target ~1024 flattened primitive rows (the 512-2048 sweet
    # spot for the HBM roofline); keep the single-step case for tiny B.
    # TODO(synk): on v7x cap Bt at pl.cdiv(B, 2) so both TensorCores get a grid step.
    if batch_rows_per_step is None:
        batch_rows_per_step = max(1, 1024 // P)
    Bt = min(B, batch_rows_per_step)
    if Bt < B:
        Bt = max(8, (Bt // 8) * 8)    # keep blocks sublane-aligned when the grid has >1 step
    G = pl.cdiv(B, Bt)
    Bpad = G * Bt
    Np = Bt * P                        # flattened primitive rows per step

    f32 = jnp.float32
    # (B, P, D) -> (B*P, D) is a free row-major reshape; only the bf16 cast and
    # (when G > 1) a small zero row pad touch HBM.  No feature-dim padding.
    x2 = obs.reshape(B * P, D).astype(jnp.bfloat16)
    m2 = mask.astype(f32)
    if Bpad > B:
        x2 = jnp.pad(x2, ((0, (Bpad - B) * P), (0, 0)))
        m2 = jnp.pad(m2, ((0, Bpad - B), (0, 0)))
    m3 = m2[..., None]                                            # (Bpad, P, 1)

    out = pl.pallas_call(
        critic_kernel,
        out_shape=jax.ShapeDtypeStruct((Bpad, Cp), f32),
        grid_spec=pltpu.PrefetchScalarGridSpec(
            num_scalar_prefetch=0,
            grid=(G,),
            in_specs=[
                pl.BlockSpec((Np, D), lambda g: (g, 0)),          # activations, bf16, true D
                pl.BlockSpec((Bt, P, 1), lambda g: (g, 0, 0)),    # coords mask
                pl.BlockSpec((D, Hp), lambda g: (0, 0)),          # W1 (resident)
                pl.BlockSpec((1, Hp), lambda g: (0, 0)),          # b1
                pl.BlockSpec((Hp, Cp), lambda g: (0, 0)),         # W2
                pl.BlockSpec((1, Cp), lambda g: (0, 0)),          # b2
            ],
            out_specs=pl.BlockSpec((Bt, Cp), lambda g: (g, 0)),   # lane-dense output slab
        ),
        compiler_params=pltpu.CompilerParams(
            dimension_semantics=("parallel",)),
        # TODO(synk): when scaling Bt past ~4k rows on v5e, set vmem_limit_bytes explicitly
        # (v5e scoped default is 16 MiB); per-step footprint at the default Bt is ~2 MiB.
    )(x2, m3, w1p, b1p, w2p, b2p)

    # (Bpad, Cp) -> (B, C)
    return out[:B, :C]


# ----------------------------------------------------------------------------
# transform(): JAX glue reproducing the PyTorch feature assembly
# ----------------------------------------------------------------------------
def transform_jax(atoms_features, pre_features):
    """
    atoms_features: (B, n_atoms, n_atom_basis)  -- synthetic stand-in for SchNet output
    pre_features:   (B, P, 3 + 4 + F + 1)       float32
    returns obs (B, P, 3 + n_atom_basis + F), coords_mask (B, P)
    """
    coords_mask = pre_features[..., -1]                          # (B, P)
    encode = pre_features[..., :3]                               # (B, P, 3)
    indices = pre_features[..., 3:7].astype(jnp.int32)           # (B, P, 4)
    features = pre_features[..., 7:-1]                           # (B, P, F)
    neigh_mask = (indices > -1).astype(jnp.float32)              # (B, P, 4)

    # torch indexes with -1 (last atom) then zeroes it via the mask; clipping to 0
    # then masking is numerically identical.
    safe_idx = jnp.clip(indices, 0, None)
    gathered = jax.vmap(lambda af, idx: af[idx])(atoms_features, safe_idx)  # (B, P, 4, basis)
    prim = jnp.sum(gathered * neigh_mask[..., None], axis=-2)               # (B, P, basis)

    obs = jnp.concatenate([encode, prim, features], axis=-1)
    return obs, coords_mask


def reference_forward(obs, mask, w1, b1, w2, b2):
    # Pure-JAX reference of the critic MLP + masked mean pooling, with the same operand
    # precision policy as the kernel (bf16 activation / W1 stream, f32 math elsewhere).
    f32 = jnp.float32
    hi = jax.lax.Precision.HIGHEST
    xq = obs.astype(jnp.bfloat16).astype(f32)
    w1q = w1.astype(jnp.bfloat16).astype(f32)
    h = jnp.maximum(jnp.einsum("bpd,dh->bph", xq, w1q, precision=hi) + b1[0], 0.0)
    y = jnp.einsum("bph,hc->bpc", h, w2, precision=hi) + b2[0]
    num = jnp.sum(y * mask[..., None], axis=-2)
    den = jnp.sum(mask, axis=-1)[..., None]
    return num / den


if __name__ == "__main__":
    key = jax.random.PRNGKey(0)
    B, P, n_atoms, n_basis, F_extra = 2, 8, 16, 32, 5
    D = 3 + n_basis + F_extra          # critic input_size + (n_atom_basis - 4) in original terms
    H, C = 64, 4                       # hidden_size, crt_size
    # TODO(synk): n_head is unused; the real CustomModel is injected externally in the
    # original code, so a deterministic 2-layer MLP is used as its stand-in.

    keys = jax.random.split(key, 10)
    k1, k2, k3, k4, k5, k6, k7, k8, k9, k10 = keys

    # TODO(synk): real atoms_features come from spk.representation.SchNet over ase.Atoms;
    # replaced by a deterministic synthetic embedding table.
    atoms_features = jax.random.normal(k1, (B, n_atoms, n_basis), dtype=jnp.float32)

    # Deterministic pre_features: [encode(3) | indices(4) | features(F) | coords_mask(1)]
    encode = jax.random.normal(k2, (B, P, 3), dtype=jnp.float32)
    indices = jax.random.randint(k3, (B, P, 4), -1, n_atoms).astype(jnp.float32)
    extra = jax.random.normal(k4, (B, P, F_extra), dtype=jnp.float32)
    coords_mask = (jax.random.uniform(k5, (B, P)) > 0.3).astype(jnp.float32)
    coords_mask = coords_mask.at[:, 0].set(1.0)   # avoid zero denominator (matches usage)
    pre_features = jnp.concatenate(
        [encode, indices, extra, coords_mask[..., None]], axis=-1)

    # Deterministic critic parameters (padded / cast once, outside the per-call path)
    w1 = jax.random.normal(k6, (D, H), dtype=jnp.float32) * 0.05
    b1 = jax.random.normal(k7, (1, H), dtype=jnp.float32) * 0.05
    w2 = jax.random.normal(k8, (H, C), dtype=jnp.float32) * 0.05
    b2 = jnp.zeros((1, C), dtype=jnp.float32)
    params = prepare_critic_params(w1, b1, w2, b2)

    # --- case 1: end-to-end transform + critic, single grid step (tiny B) ---
    obs, mask = transform_jax(atoms_features, pre_features)
    out = jax.block_until_ready(critic_forward(obs, mask, params))
    ref = reference_forward(obs, mask, w1, b1, w2, b2)
    assert out.shape == (B, C)
    assert jnp.allclose(out, ref, atol=1e-4, rtol=1e-4), (out, ref)

    # --- case 2: multi-step grid (G=2) with B not a multiple of Bt (padding path) ---
    B2 = 10
    obs2 = jax.random.normal(k9, (B2, P, D), dtype=jnp.float32)
    mask2 = (jax.random.uniform(k10, (B2, P)) > 0.3).astype(jnp.float32)
    mask2 = mask2.at[:, 0].set(1.0)
    out2 = jax.block_until_ready(
        critic_forward(obs2, mask2, params, batch_rows_per_step=8))
    ref2 = reference_forward(obs2, mask2, w1, b1, w2, b2)
    assert out2.shape == (B2, C)
    assert jnp.allclose(out2, ref2, atol=1e-4, rtol=1e-4), (out2, ref2)

    print("KERNEL_OK")
</pallas_src>

<mosaic_0001>
module attributes {stable_mosaic.version = 11 : i64} {
  func.func @critic_kernel(%arg0: i32, %arg1: memref<16x40xbf16, #tpu.memory_space<vmem>>, %arg2: memref<2x8x1xf32, #tpu.memory_space<vmem>>, %arg3: memref<40x128xbf16, #tpu.memory_space<vmem>>, %arg4: memref<1x128xf32, #tpu.memory_space<vmem>>, %arg5: memref<128x128xf32, #tpu.memory_space<vmem>>, %arg6: memref<1x128xf32, #tpu.memory_space<vmem>>, %arg7: memref<2x128xf32, #tpu.memory_space<vmem>>) attributes {dimension_semantics = [#tpu.dimension_semantics<parallel>], iteration_bounds = array<i64: 1>, scalar_prefetch = 0 : i64, scratch_operands = 0 : i64, tpu.core_type = #tpu.core_type<tc>, window_params = [{transform_indices = @transform_0, window_bounds = array<i64: 16, 40>}, {transform_indices = @transform_1, window_bounds = array<i64: 2, 8, 1>}, {pipeline_mode = #tpu.pipeline_mode<synchronous>, transform_indices = @transform_2, window_bounds = array<i64: 40, 128>}, {pipeline_mode = #tpu.pipeline_mode<synchronous>, transform_indices = @transform_3, window_bounds = array<i64: 1, 128>}, {pipeline_mode = #tpu.pipeline_mode<synchronous>, transform_indices = @transform_4, window_bounds = array<i64: 128, 128>}, {pipeline_mode = #tpu.pipeline_mode<synchronous>, transform_indices = @transform_5, window_bounds = array<i64: 1, 128>}, {transform_indices = @transform_6, window_bounds = array<i64: 2, 128>}]} {
    %c0 = arith.constant 0 : index
    %c0_0 = arith.constant 0 : index
    %0 = vector.load %arg1[%c0, %c0_0] : memref<16x40xbf16, #tpu.memory_space<vmem>>, vector<16x40xbf16>
    %c0_1 = arith.constant 0 : index
    %c0_2 = arith.constant 0 : index
    %1 = vector.load %arg3[%c0_1, %c0_2] : memref<40x128xbf16, #tpu.memory_space<vmem>>, vector<40x128xbf16>
    %cst = arith.constant dense<0.000000e+00> : vector<16x128xf32>
    %2 = tpu.matmul %0, %1, %cst {dimension_numbers = #tpu.dot_dimension_numbers<[1], [0], [0], [1], [0, 0, 1, 1], [], []>} : vector<16x40xbf16>, vector<40x128xbf16>, vector<16x128xf32> -> vector<16x128xf32>
    %c0_3 = arith.constant 0 : index
    %c0_4 = arith.constant 0 : index
    %3 = vector.load %arg4[%c0_3, %c0_4] : memref<1x128xf32, #tpu.memory_space<vmem>>, vector<1x128xf32>
    %4 = vector.broadcast %3 : vector<1x128xf32> to vector<16x128xf32>
    %5 = arith.addf %2, %4 : vector<16x128xf32>
    %cst_5 = arith.constant 0.000000e+00 : f32
    %6 = vector.broadcast %cst_5 : f32 to vector<16x128xf32>
    %7 = arith.maximumf %5, %6 : vector<16x128xf32>
    %8 = vector.shape_cast %7 : vector<16x128xf32> to vector<2x8x128xf32>
    %c0_6 = arith.constant 0 : index
    %c0_7 = arith.constant 0 : index
    %c0_8 = arith.constant 0 : index
    %9 = vector.load %arg2[%c0_6, %c0_7, %c0_8] : memref<2x8x1xf32, #tpu.memory_space<vmem>>, vector<2x8x1xf32>
    %10 = vector.broadcast %9 : vector<2x8x1xf32> to vector<2x8x128xf32>
    %11 = arith.mulf %8, %10 : vector<2x8x128xf32>
    %cst_9 = arith.constant dense<0.000000e+00> : vector<2x128xf32>
    %12 = vector.multi_reduction <add>, %11, %cst_9 [1] : vector<2x8x128xf32> to vector<2x128xf32>
    %cst_10 = arith.constant dense<0.000000e+00> : vector<2x1xf32>
    %13 = vector.multi_reduction <add>, %9, %cst_10 [1] : vector<2x8x1xf32> to vector<2x1xf32>
    %c0_11 = arith.constant 0 : index
    %c0_12 = arith.constant 0 : index
    %14 = vector.load %arg5[%c0_11, %c0_12] : memref<128x128xf32, #tpu.memory_space<vmem>>, vector<128x128xf32>
    %cst_13 = arith.constant dense<0.000000e+00> : vector<2x128xf32>
    %15 = tpu.matmul %12, %14, %cst_13 {dimension_numbers = #tpu.dot_dimension_numbers<[1], [0], [0], [1], [0, 0, 1, 1], [], []>} : vector<2x128xf32>, vector<128x128xf32>, vector<2x128xf32> -> vector<2x128xf32>
    %cst_14 = arith.constant 9.99999997E-7 : f32
    %16 = vector.broadcast %cst_14 : f32 to vector<2x1xf32>
    %17 = arith.maximumf %13, %16 : vector<2x1xf32>
    %18 = tpu.reciprocal %17 {approx = true} : vector<2x1xf32> -> vector<2x1xf32>
    %19 = arith.mulf %17, %18 : vector<2x1xf32>
    %cst_15 = arith.constant 2.000000e+00 : f32
    %20 = vector.broadcast %cst_15 : f32 to vector<2x1xf32>
    %21 = arith.subf %20, %19 : vector<2x1xf32>
    %22 = arith.mulf %18, %21 : vector<2x1xf32>
    %23 = vector.broadcast %22 : vector<2x1xf32> to vector<2x128xf32>
    %24 = arith.mulf %15, %23 : vector<2x128xf32>
    %c0_16 = arith.constant 0 : index
    %c0_17 = arith.constant 0 : index
    %25 = vector.load %arg6[%c0_16, %c0_17] : memref<1x128xf32, #tpu.memory_space<vmem>>, vector<1x128xf32>
    %26 = vector.broadcast %25 : vector<1x128xf32> to vector<2x128xf32>
    %27 = arith.addf %24, %26 : vector<2x128xf32>
    %c0_18 = arith.constant 0 : index
    %c0_19 = arith.constant 0 : index
    %28 = vector.load %arg7[%c0_18, %c0_19] : memref<2x128xf32, #tpu.memory_space<vmem>>, vector<2x128xf32>
    tpu.vector_store %arg7[%c0_18, %c0_19], %27 {strides = array<i32>} : memref<2x128xf32, #tpu.memory_space<vmem>>, vector<2x128xf32>,
    return
  }
  func.func @transform_0(%arg0: i32) -> (i32, i32) {
    %c0_i32 = arith.constant 0 : i32
    %c0_i32_0 = arith.constant 0 : i32
    return %arg0, %c0_i32 : i32, i32
  }
  func.func @transform_1(%arg0: i32) -> (i32, i32, i32) {
    %c0_i32 = arith.constant 0 : i32
    %c0_i32_0 = arith.constant 0 : i32
    %c0_i32_1 = arith.constant 0 : i32
    return %arg0, %c0_i32, %c0_i32_0 : i32, i32, i32
  }
  func.func @transform_2(%arg0: i32) -> (i32, i32) {
    %c0_i32 = arith.constant 0 : i32
    %c0_i32_0 = arith.constant 0 : i32
    %c0_i32_1 = arith.constant 0 : i32
    return %c0_i32, %c0_i32_0 : i32, i32
  }
  func.func @transform_3(%arg0: i32) -> (i32, i32) {
    %c0_i32 = arith.constant 0 : i32
    %c0_i32_0 = arith.constant 0 : i32
    %c0_i32_1 = arith.constant 0 : i32
    return %c0_i32, %c0_i32_0 : i32, i32
  }
  func.func @transform_4(%arg0: i32) -> (i32, i32) {
    %c0_i32 = arith.constant 0 : i32
    %c0_i32_0 = arith.constant 0 : i32
    %c0_i32_1 = arith.constant 0 : i32
    return %c0_i32, %c0_i32_0 : i32, i32
  }
  func.func @transform_5(%arg0: i32) -> (i32, i32) {
    %c0_i32 = arith.constant 0 : i32
    %c0_i32_0 = arith.constant 0 : i32
    %c0_i32_1 = arith.constant 0 : i32
    return %c0_i32, %c0_i32_0 : i32, i32
  }
  func.func @transform_6(%arg0: i32) -> (i32, i32) {
    %c0_i32 = arith.constant 0 : i32
    %c0_i32_0 = arith.constant 0 : i32
    return %arg0, %c0_i32 : i32, i32
  }
}

</mosaic_0001>

<bundles_post_ra>
// kernel: tpu_custom_call.1
= control target key start
LH: loop header
LB: loop body
LE: loop exit
PB: predicated region body
PF: predicated region fallthrough
CT: control target
= control target key end

     0   :  { %11 = vsyncpa [#allocation3], 0  ;;  %s617_s0 = inlined_call_operand.hbm [shape: bf16[16,40], index: 0, kind: input, shape index: {}]   ;;  %s618_s1 = inlined_call_operand.vmem [shape: f32[2,8,1], index: 1, kind: input, shape index: {}]   ;;  %s619_s2 = inlined_call_operand.vmem [shape: bf16[40,128], index: 2, kind: input, shape index: {}]   ;;  %s620_s3 = inlined_call_operand.vmem [shape: f32[1,128], index: 3, kind: input, shape index: {}]   ;;  %s621_s4 = inlined_call_operand.hbm [shape: f32[128,128], index: 4, kind: input, shape index: {}]   ;;  %s622_s5 = inlined_call_operand.vmem [shape: f32[1,128], index: 5, kind: input, shape index: {}]   ;;  %s623_s6 = inlined_call_operand.hbm [shape: f32[2,128], index: 6, kind: output, shape index: {}]  }
   0x1   :  { %12 = vsyncpa [#allocation6], 0 }
   0x2   :  { %13 = vsyncpa [#allocation4], 0  ;;  %s506_s21 = smov [#allocation2]   ;;  %s434_s25 = scalar_lea.hbm %s617_s0, 128 }
   0x3   :  { %s19_s22 = sshll.u32 %s506_s21, 4  ;;  %p435_p0 = scmp.ne.s32.totalorder %s617_s0, %s434_s25  ;;  %s20_s22 = int_to_ptr.vmem [resolvable:$true] %s19_s22 }
   0x4   :  { %p438_p1 = scmp.lt.u32.totalorder %s434_s25, %s617_s0 }
   0x6   :  { %p440_p2 = pnand %p438_p1, %p435_p0 }
   0x8   :  { %443 = shalt.err (!%p440_p2)
}
   0x9   :  { %s444_s30 = scalar_lea.vmem %s20_s22, 128  ;;  %p449_p4 = scmp.lt.s32.totalorder %s20_s22, %s20_s22 }
   0xa   :  { %p445_p3 = scmp.ne.s32.totalorder %s20_s22, %s444_s30  ;;  %p450_p5 = scmp.lt.s32.totalorder %s444_s30, %s444_s30 }
   0xc   :  { %p451_p6 = por %p450_p5, %p449_p4 }
   0xe   :  { %p452_p7 = pnand %p451_p6, %p445_p3 }
  0x10   :  { %455 = shalt.err (!%p452_p7)
}
  0x11   :  { %s507_s7 = smov 64   ;;  %s508_s8 = smov 4  }
  0x12   :  { %25 = dma.hbm_to_vmem [thread:$0]  %s617_s0, 128, %s20_s22, [#allocation3], %s507_s7, %s507_s7, %s508_s8  }
  0x13   :  { %s509_s11 = smov [#allocation5]   ;;  %s456_s15 = scalar_lea.hbm %s621_s4, 2048 }
  0x14   :  { %s37_s12 = sshll.u32 %s509_s11, 4  ;;  %p457_p8 = scmp.ne.s32.totalorder %s621_s4, %s456_s15  ;;  %s38_s12 = int_to_ptr.vmem [resolvable:$true] %s37_s12 }
  0x15   :  { %p460_p9 = scmp.lt.u32.totalorder %s456_s15, %s621_s4 }
  0x17   :  { %p462_p10 = pnand %p460_p9, %p457_p8 }
  0x19   :  { %465 = shalt.err (!%p462_p10)
}
  0x1a   :  { %s466_s20 = scalar_lea.vmem %s38_s12, 2048  ;;  %p471_p12 = scmp.lt.s32.totalorder %s38_s12, %s38_s12 }
  0x1b   :  { %p467_p11 = scmp.ne.s32.totalorder %s38_s12, %s466_s20  ;;  %p472_p13 = scmp.lt.s32.totalorder %s466_s20, %s466_s20 }
  0x1d   :  { %p473_p0 = por %p472_p13, %p471_p12 }
  0x1f   :  { %p474_p1 = pnand %p473_p0, %p467_p11 }
  0x21   :  { %477 = shalt.err (!%p474_p1)
}
  0x22   :  { %s510_s0 = smov 128   ;;  %s511_s21 = smov 8  }
  0x23   :  { %43 = dma.hbm_to_vmem [thread:$0]  %s621_s4, 2048, %s38_s12, [#allocation6], %s510_s0, %s510_s0, %s511_s21  }
  0x24   :  { %500 = dma.done.wait [#allocation3], 128  }
  0x25   :  { %501 = vsyncadd [#allocation3], 4294967168 }
  0x26   :  { %502 = dma.done.wait [#allocation6], 2048  }
  0x27   :  { %503 = vsyncadd [#allocation6], 4294965248  ;;  %v512_v0 = vmov 0.0   ;;  %vm513_vm0 = vmmov 0   ;;  %v514_v1 = vmov 0   ;;  %v515_v2 = vmov 0.0|0.0  }
  0x28   :  { %344 = vmatprep.subr.bf16.mxu0 %v512_v0  ;;  %350 = vmatprep.mubr.msk.bf16.mxu0 %vm513_vm0, %v512_v0  ;;  %v426_v3 = vld [vmem:[%s619_s2] sm:$0xff]   ;;  %v427_v4 = vld [vmem:[%s619_s2 + $0x8] sm:$0xff]   ;;  %v428_v5 = vld [vmem:[%s619_s2 + $0x10] ss:$0 sps:$4 sm:$0xff]   ;;  %vm91_vm1 = vcmask 1043456   ;;  %vm87_vm2 = vcmask 326656  }
  0x29   :  { %424 = vset.pattern.permute.xlu0 %v514_v1  ;;  %389 = vmatprep.subr.bf16.mxu1 %v515_v2  ;;  %v138_v6 = vld [vmem:[%s618_s1] sm:$0xff]  ;;  %v179_v7 = vld [vmem:[#allocation5] sm:$0xff]  ;;  %v180_v8 = vld [vmem:[#allocation5 + $0x8] sm:$0xff]  ;;  %v93_v13 = vsel %vm91_vm1, %v428_v5, 0  ;;  %vm164_vm3 = vcmask 7168   ;;  %vm197_vm4 = vcmask 1041409  }
  0x2a   :  { %386 = vmatprep.mubr.msk.f32.mxu1 %vm513_vm0, %v512_v0  ;;  %425 = vset.pattern.permute.xlu1 %v514_v1  ;;  %v139_v9 = vld [vmem:[%s618_s1 + $0x8] sm:$0xff]  ;;  %v390_v10 = vpack.c.bf16 %v180_v8, %v179_v7  ;;  %v181_v11 = vld [vmem:[#allocation5 + $0x10] sm:$0xff]  ;;  %v182_v12 = vld [vmem:[#allocation5 + $0x18] sm:$0xff]  ;;  %v165_v22 = vsel %vm164_vm3, %v138_v6, 0.0  ;;  %s516_s10 = smov [#allocation7]  }
  0x2b   :  { %345 = vmatpush3.bf16.msra.mxu0 %v426_v3  ;;  %142 = vperm.xlu0 %424, %v138_v6   ;;  %v393_v14 = vpack.c.bf16 %v182_v12, %v181_v11  ;;  %v183_v15 = vld [vmem:[#allocation5 + $0x20] sm:$0xff]  ;;  %v184_v16 = vld [vmem:[#allocation5 + $0x28] sm:$0xff]  ;;  %v429_v17 = vld [vmem:[#allocation2] sm:$0xff]   ;;  %v172_v19 = vsel %vm164_vm3, %v139_v9, 0.0  ;;  %v166_v26 = vrot.slane %v165_v22, 4  ;;  %s306_s11 = sshll.u32 %s516_s10, 4  ;;  %s307_s11 = int_to_ptr.vmem [resolvable:$true] %s306_s11 }
  0x2c   :  { %346 = vmatprep.subr.bf16.mxu0 %v512_v0  ;;  %391 = vmatpush3.bf16.msra.mxu1 %v390_v10  ;;  %v396_v18 = vpack.c.bf16 %v184_v16, %v183_v15  ;;  %v173_v20 = vrot.slane %v172_v19, 4  ;;  %v185_v23 = vld [vmem:[#allocation5 + $0x30] sm:$0xff]  ;;  %v186_v24 = vld [vmem:[#allocation5 + $0x38] sm:$0xff]  ;;  %v187_v28 = vld [vmem:[#allocation5 + $0x40] sm:$0xff]  ;;  %s478_s12 = scalar_lea.vmem %s307_s11, 32  ;;  %p483_p3 = scmp.lt.s32.totalorder %s307_s11, %s307_s11 }
  0x2d   :  { %392 = vmatprep.subr.bf16.mxu1 %v515_v2  ;;  %v399_v25 = vpack.c.bf16 %v186_v24, %v185_v23  ;;  %v188_v29 = vld [vmem:[#allocation5 + $0x48] sm:$0xff]  ;;  %v167_v31 = vadd.f32 %v166_v26, %v165_v22  ;;  %v189_v33 = vld [vmem:[#allocation5 + $0x50] sm:$0xff]  ;;  %v190_v34 = vld [vmem:[#allocation5 + $0x58] sm:$0xff]  ;;  %p479_p2 = scmp.ne.s32.totalorder %s307_s11, %s478_s12  ;;  %p484_p4 = scmp.lt.s32.totalorder %s478_s12, %s478_s12 }
  0x2e   :  { %v174_v21 = vadd.f32 %v173_v20, %v172_v19  ;;  %v402_v30 = vpack.c.bf16 %v188_v29, %v187_v28  ;;  %v405_v35 = vpack.c.bf16 %v190_v34, %v189_v33  ;;  %v191_v38 = vld [vmem:[#allocation5 + $0x60] sm:$0xff]  ;;  %v192_v39 = vld [vmem:[#allocation5 + $0x68] sm:$0xff]  ;;  %v193_v43 = vld [vmem:[#allocation5 + $0x70] sm:$0xff] }
  0x2f   :  { %347 = vmatpush3.bf16.msra.mxu0 %v427_v4  ;;  %147 = vperm.xlu0 %424, %v139_v9   ;;  %v168_v36 = vrot.slane %v167_v31, 2  ;;  %v408_v40 = vpack.c.bf16 %v192_v39, %v191_v38  ;;  %v194_v44 = vld [vmem:[#allocation5 + $0x78] sm:$0xff]  ;;  %p485_p5 = por %p484_p4, %p483_p3 }
  0x30   :  { %348 = vmatprep.subr.bf16.mxu0 %v512_v0  ;;  %394 = vmatpush3.bf16.msra.mxu1 %v393_v14  ;;  %v175_v27 = vrot.slane %v174_v21, 2  ;;  %v411_v45 = vpack.c.bf16 %v194_v44, %v193_v43  ;;  %v316_v58 = vld [vmem:[%s620_s3] ss:$0 sm:$0xff] }
  0x31   :  { %395 = vmatprep.subr.bf16.mxu1 %v515_v2  ;;  %v169_v41 = vadd.f32 %v168_v36, %v167_v31  ;;  %v322_v24 = vld [vmem:[%s622_s5] ss:$0 sm:$0xff]  ;;  %p486_p6 = pnand %p485_p5, %p479_p2 }
  0x32   :  { %v176_v32 = vadd.f32 %v175_v27, %v174_v21 }
  0x33   :  { %349 = vmatpush3.bf16.msra.mxu0 %v93_v13  ;;  %v170_v46 = vrot.slane %v169_v41, 1 }
  0x34   :  { %397 = vmatpush3.bf16.msra.mxu1 %v396_v18  ;;  %v177_v37 = vrot.slane %v176_v32, 1 }
  0x35   :  { %398 = vmatprep.subr.bf16.mxu1 %v515_v2  ;;  %v171_v48 = vadd.f32 %v170_v46, %v169_v41 }
  0x36   :  { %351 = vmatmul.mubr.msk.bf16.vlgmr.msra.gmra.mrb[0].mxu0 %vm87_vm2, %v429_v17  ;;  %v178_v42 = vadd.f32 %v177_v37, %v176_v32 }
  0x37   :  { %v270_v49 = vmax.f32 %v171_v48, 1e-06 }
  0x38   :  { %400 = vmatpush3.bf16.msra.mxu1 %v399_v25  ;;  %v271_v47 = vmax.f32 %v178_v42, 1e-06 }
  0x39   :  { %401 = vmatprep.subr.bf16.mxu1 %v515_v2 }
  0x3a   :  { %430 = vrcp.f32 %v271_v47 }
  0x3b   :  { %432 = vrcp.f32 %v270_v49 }
  0x3c   :  { %403 = vmatpush3.bf16.msra.mxu1 %v402_v30 }
  0x3d   :  { %404 = vmatprep.subr.bf16.mxu1 %v515_v2 }
  0x40   :  { %406 = vmatpush3.bf16.msra.mxu1 %v405_v35 }
  0x41   :  { %407 = vmatprep.subr.bf16.mxu1 %v515_v2 }
  0x44   :  { %409 = vmatpush3.bf16.msra.mxu1 %v408_v40  ;;  %v431_v50 = vpop.eup %430 }
  0x45   :  { %410 = vmatprep.subr.bf16.mxu1 %v515_v2  ;;  %v275_v51 = vmul.f32 %v431_v50, %v271_v47  ;;  %v433_v52 = vpop.eup %432 }
  0x46   :  { %v274_v53 = vmul.f32 %v433_v52, %v270_v49 }
  0x47   :  { %v277_v55 = vsub.f32 2.0, %v275_v51 }
  0x48   :  { %412 = vmatpush3.bf16.msra.mxu1 %v411_v45  ;;  %v276_v54 = vsub.f32 2.0, %v274_v53 }
  0x49   :  { %v279_v57 = vmul.f32 %v431_v50, %v277_v55 }
  0x4a   :  { %v278_v56 = vmul.f32 %v433_v52, %v276_v54 }
  0x4c   :  { %282 = vperm.xlu1 %425, %v278_v56  }
  0x50   :  { %286 = vperm.xlu1 %425, %v279_v57  }
  0xaa   :  { %v143_v59 = vpop.permute.xlu0 %142 }
  0xae   :  { %v148_v5 = vpop.permute.xlu0 %147 }
  0xcb   :  { %v283_v20 = vpop.permute.xlu1 %282 }
  0xcf   :  { %v287_v21 = vpop.permute.xlu1 %286 }
  0xd0   :  { %v288_v23 = vsel %vm197_vm4, %v287_v21, %v283_v20 }
 0x109   :  { %v129_v60 = vpop.f32.mrb[0].mxu0 }
 0x10a   :  { %v130_v61 = vadd.f32 %v316_v58, %v129_v60  ;;  %v352_v62 = vpop.f32.mrb[1].mxu0 }
 0x10b   :  { %v132_v63 = vpop.f32.mrb[2].mxu0 }
 0x10c   :  { %v136_v0 = vmax.f32 %v130_v61, 0.0  ;;  %v133_v1 = vadd.f32 %v316_v58, %v132_v63  ;;  %v353_v2 = vpop.f32.mrb[3].mxu0 }
 0x10e   :  { %v150_v3 = vmul.f32 %v143_v59, %v136_v0  ;;  %v137_v4 = vmax.f32 %v133_v1, 0.0 }
 0x110   :  { %v152_v6 = vrot.slane %v150_v3, 4  ;;  %v151_v7 = vmul.f32 %v148_v5, %v137_v4 }
 0x112   :  { %v153_v8 = vadd.f32 %v152_v6, %v150_v3  ;;  %v158_v9 = vrot.slane %v151_v7, 4 }
 0x114   :  { %v154_v10 = vrot.slane %v153_v8, 2  ;;  %v159_v11 = vadd.f32 %v158_v9, %v151_v7 }
 0x116   :  { %v155_v12 = vadd.f32 %v154_v10, %v153_v8  ;;  %v160_v13 = vrot.slane %v159_v11, 2 }
 0x118   :  { %v161_v14 = vadd.f32 %v160_v13, %v159_v11  ;;  %v156_v15 = vrot.slane %v155_v12, 1 }
 0x11a   :  { %v162_v16 = vrot.slane %v161_v14, 1  ;;  %v157_v17 = vadd.f32 %v156_v15, %v155_v12 }
 0x11c   :  { %v163_v18 = vadd.f32 %v162_v16, %v161_v14 }
 0x11e   :  { %v198_v19 = vsel %vm197_vm4, %v163_v18, %v157_v17 }
 0x11f   :  { %387 = vmatmul.mubr.f32.vlgmr.msra.gmra.mrb[0].mxu1 %v198_v19 }
 0x1f2   :  { %v266_v22 = vpop.f32.mrb[0].mxu1 }
 0x1f3   :  { %v290_v25 = vmul.f32 %v288_v23, %v266_v22  ;;  %v388_v26 = vpop.f32.mrb[1].mxu1 }
 0x1f5   :  { %v298_v27 = vadd.f32 %v322_v24, %v290_v25 }
 0x1f7   :  { %299 = vst [vmem:[#allocation7] sm:$0x3] %v298_v27 }
 0x1f8   :  { %489 = shalt.err (!%p486_p6)
}
 0x1f9   :  { %s490_s15 = scalar_lea.hbm %s623_s6, 32 }
 0x1fa   :  { %p491_p7 = scmp.ne.s32.totalorder %s623_s6, %s490_s15  ;;  %p494_p8 = scmp.lt.u32.totalorder %s490_s15, %s623_s6 }
 0x1fc   :  { %p496_p9 = pnand %p494_p8, %p491_p7 }
 0x1fe   :  { %499 = shalt.err (!%p496_p9)
}
 0x1ff   :  { %309 = dma.vmem_to_hbm [thread:$0]  %s307_s11, 32, %s623_s6, [#allocation4]  }
 0x200   :  { %504 = dma.done.wait [#allocation4], 32  }
 0x201   :  { %505 = vsyncadd [#allocation4], 4294967264 }
 0x202   :  { %313 = vsyncpa [#allocation3], 1 }
 0x203   :  { %314 = vsyncpa [#allocation6], 1 }
 0x204   :  { %315 = vsyncpa [#allocation4], 1 }

</bundles_post_ra>
